<compile_context>
chip_gen: v7x
topology: tpu7x:2x2x1
jax: 0.10.0
libtpu: 0.0.40
codegen_flags: <defaults>
</compile_context>

<pallas_src>
import functools
import math

import jax
import jax.numpy as jnp
from jax import lax
from jax.experimental import pallas as pl
from jax.experimental.pallas import tpu as pltpu

INPUT_SIZE = 1
HIDDEN = 32


def rnn_kernel(x_ref, h0_ref, w_ih_ref, w_hh_ref, b_ref, w_out_ref, b_out_ref,
               y_ref, h_out_ref, *, unroll):
    # x_ref:    (T, 1, BB)  time-major input rows (batch on the 128-lane axis)
    # h0_ref:   (H, BB)     initial hidden state (lane-packed: H on sublanes)
    # w_ih_ref: (H, 1)      W_ih column (input_size == 1)
    # w_hh_ref: (H, H)      W_hh (column-form recurrence: h_new = W_hh @ h)
    # b_ref:    (H, 1)      b_ih + b_hh
    # w_out_ref:(H, 1)      W_out column (output size == 1)
    # b_out_ref:(1,)        output bias scalar (SMEM)
    # y_ref:    (T, 1, BB)  per-time-step Linear output (time-major)
    # h_out_ref:(H, BB)     final hidden state
    T = x_ref.shape[0]
    H, BB = h0_ref.shape

    w_hh = w_hh_ref[...]
    # Hoisted lane broadcasts (once per kernel call; JAX does not CSE
    # broadcast_in_dim, so these must never sit inside the step loop).
    w_ih_b = jnp.broadcast_to(w_ih_ref[...], (H, BB))
    b_b = jnp.broadcast_to(b_ref[...], (H, BB))
    w_out_b = jnp.broadcast_to(w_out_ref[...], (H, BB))
    b_out = b_out_ref[0]

    def step(t, h):
        # Input projection: rank-1 VPU multiply-add with no dependence on h, so it
        # overlaps with the previous step's MXU push / tanh latency.
        pre = x_ref[t] * w_ih_b + b_b                     # (1,BB)*(H,BB) sublane bcast
        h_new = jnp.tanh(pre + jnp.dot(w_hh, h, preferred_element_type=jnp.float32))
        # Output Linear folded into the loop: sublane reduce (XLU) + one dense
        # 128-lane row store per step. Both have slack under the serial MXU->EUP
        # chain, and this removes the (T, BB, H) history scratch entirely.
        y_ref[t] = jnp.sum(h_new * w_out_b, axis=0, keepdims=True) + b_out
        return h_new

    h_out_ref[...] = lax.fori_loop(0, T, step, h0_ref[...],
                                   unroll=min(int(T), unroll))


def rnn_forward(x, h_state, params, *, batch_block=128, unroll=8):
    """x: (B, T, 1) f32, h_state: None or (1, B, H) -> (y (B, T, 1), h (1, B, H))."""
    B, T, _ = x.shape
    BB = batch_block
    B_pad = ((B + BB - 1) // BB) * BB
    nb = B_pad // BB
    H = HIDDEN

    x2 = x[..., 0].astype(jnp.float32)                              # (B, T)
    h0 = (jnp.zeros((B, H), jnp.float32) if h_state is None
          else h_state[0].astype(jnp.float32))
    if B_pad != B:
        x2 = jnp.pad(x2, ((0, B_pad - B), (0, 0)))
        h0 = jnp.pad(h0, ((0, B_pad - B), (0, 0)))

    # Time-major, batch-on-lanes blocks. (The wrapper transpose is a single extra
    # mem-bound XLA op; negligible at these sizes.)
    x_tb = x2.reshape(nb, BB, T).transpose(0, 2, 1)[:, :, None, :]  # (nb, T, 1, BB)
    h0_b = h0.reshape(nb, BB, H).transpose(0, 2, 1)                 # (nb, H, BB)

    w_ih = params["w_ih"].astype(jnp.float32)                       # (H, 1) column
    w_hh = params["w_hh"].astype(jnp.float32)                       # (H, H)
    b = (params["b_ih"] + params["b_hh"]).astype(jnp.float32)[:, None]  # (H, 1)
    w_out = params["w_out"].astype(jnp.float32).T                   # (H, 1) column
    b_out = params["b_out"].astype(jnp.float32)                     # (1,)

    kernel = functools.partial(rnn_kernel, unroll=unroll)

    y_tb, h_out = pl.pallas_call(
        kernel,
        out_shape=(
            jax.ShapeDtypeStruct((nb, T, 1, BB), jnp.float32),
            jax.ShapeDtypeStruct((nb, H, BB), jnp.float32),
        ),
        grid=(nb,),
        in_specs=[
            pl.BlockSpec((None, T, 1, BB), lambda i: (i, 0, 0, 0)),  # x (time-major)
            pl.BlockSpec((None, H, BB), lambda i: (i, 0, 0)),        # h0
            pl.BlockSpec((H, 1), lambda i: (0, 0)),                  # w_ih column
            pl.BlockSpec((H, H), lambda i: (0, 0)),                  # w_hh
            pl.BlockSpec((H, 1), lambda i: (0, 0)),                  # b_ih + b_hh
            pl.BlockSpec((H, 1), lambda i: (0, 0)),                  # w_out column
            pl.BlockSpec(memory_space=pltpu.MemorySpace.SMEM),       # b_out scalar
        ],
        out_specs=(
            pl.BlockSpec((None, T, 1, BB), lambda i: (i, 0, 0, 0)),  # y (time-major)
            pl.BlockSpec((None, H, BB), lambda i: (i, 0, 0)),        # h_final
        ),
        compiler_params=pltpu.CompilerParams(
            dimension_semantics=("parallel",),        # second TensorCore on v7x
            vmem_limit_bytes=32 * 1024 * 1024,        # v5e scoped default is 16 MiB
        ),
    )(x_tb, h0_b, w_ih, w_hh, b, w_out, b_out)

    y = y_tb[:, :, 0, :].transpose(0, 2, 1).reshape(B_pad, T)[:B]    # (B, T)
    h_final = h_out.transpose(0, 2, 1).reshape(B_pad, H)[:B]         # (B, H)
    return y[..., None], h_final[None]


def init_params(key):
    """Deterministic init matching PyTorch's default U(-1/sqrt(H), 1/sqrt(H)) layout."""
    k = 1.0 / math.sqrt(HIDDEN)
    ks = jax.random.split(key, 6)
    return {
        "w_ih": jax.random.uniform(ks[0], (HIDDEN, INPUT_SIZE), jnp.float32, -k, k),
        "w_hh": jax.random.uniform(ks[1], (HIDDEN, HIDDEN), jnp.float32, -k, k),
        "b_ih": jax.random.uniform(ks[2], (HIDDEN,), jnp.float32, -k, k),
        "b_hh": jax.random.uniform(ks[3], (HIDDEN,), jnp.float32, -k, k),
        "w_out": jax.random.uniform(ks[4], (1, HIDDEN), jnp.float32, -k, k),
        "b_out": jax.random.uniform(ks[5], (1,), jnp.float32, -k, k),
    }


def rnn_forward_ref(x, h_state, params):
    """Plain-JAX reference mirroring the PyTorch forward."""
    B, T, _ = x.shape
    h = jnp.zeros((B, HIDDEN), jnp.float32) if h_state is None else h_state[0]
    outs = []
    for t in range(T):
        x_t = x[:, t, :]                                             # (B, 1)
        h = jnp.tanh(x_t @ params["w_ih"].T + params["b_ih"]
                     + h @ params["w_hh"].T + params["b_hh"])
        outs.append(h @ params["w_out"].T + params["b_out"])         # (B, 1)
    return jnp.stack(outs, axis=1), h[None]


if __name__ == "__main__":
    key = jax.random.PRNGKey(0)
    k_param, k_x = jax.random.split(key)
    params = init_params(k_param)

    B, T = 2, 8
    x = jax.random.normal(k_x, (B, T, INPUT_SIZE), jnp.float32)
    h_state = None  # same as the PyTorch script's initial call

    y, h_out = rnn_forward(x, h_state, params)
    y = jax.block_until_ready(y)
    h_out = jax.block_until_ready(h_out)

    y_ref, h_ref = rnn_forward_ref(x, h_state, params)
    assert y.shape == (B, T, 1) and h_out.shape == (1, B, HIDDEN)
    assert jnp.allclose(y, y_ref, atol=1e-5, rtol=1e-5)
    assert jnp.allclose(h_out, h_ref, atol=1e-5, rtol=1e-5)

    print("KERNEL_OK")
</pallas_src>

<mosaic_0001>
module attributes {stable_mosaic.version = 11 : i64} {
  func.func @rnn_kernel(%arg0: i32, %arg1: memref<1x8x1x128xf32, #tpu.memory_space<vmem>>, %arg2: memref<1x32x128xf32, #tpu.memory_space<vmem>>, %arg3: memref<32x1xf32, #tpu.memory_space<vmem>>, %arg4: memref<32x32xf32, #tpu.memory_space<vmem>>, %arg5: memref<32x1xf32, #tpu.memory_space<vmem>>, %arg6: memref<32x1xf32, #tpu.memory_space<vmem>>, %arg7: memref<1xf32, #tpu.memory_space<smem>>, %arg8: memref<1x8x1x128xf32, #tpu.memory_space<vmem>>, %arg9: memref<1x32x128xf32, #tpu.memory_space<vmem>>) attributes {dimension_semantics = [#tpu.dimension_semantics<parallel>], iteration_bounds = array<i64: 1>, scalar_prefetch = 0 : i64, scratch_operands = 0 : i64, tpu.core_type = #tpu.core_type<tc>, window_params = [{transform_indices = @transform_0, window_bounds = array<i64: 1, 8, 1, 128>}, {transform_indices = @transform_1, window_bounds = array<i64: 1, 32, 128>}, {pipeline_mode = #tpu.pipeline_mode<synchronous>, transform_indices = @transform_2, window_bounds = array<i64: 32, 1>}, {pipeline_mode = #tpu.pipeline_mode<synchronous>, transform_indices = @transform_3, window_bounds = array<i64: 32, 32>}, {pipeline_mode = #tpu.pipeline_mode<synchronous>, transform_indices = @transform_4, window_bounds = array<i64: 32, 1>}, {pipeline_mode = #tpu.pipeline_mode<synchronous>, transform_indices = @transform_5, window_bounds = array<i64: 32, 1>}, {transform_indices = @transform_6, window_bounds = array<i64: 1>}, {transform_indices = @transform_7, window_bounds = array<i64: 1, 8, 1, 128>}, {transform_indices = @transform_8, window_bounds = array<i64: 1, 32, 128>}]} {
    %c0 = arith.constant 0 : index
    %c0_0 = arith.constant 0 : index
    %0 = vector.load %arg4[%c0, %c0_0] : memref<32x32xf32, #tpu.memory_space<vmem>>, vector<32x32xf32>
    %c0_1 = arith.constant 0 : index
    %c0_2 = arith.constant 0 : index
    %1 = vector.load %arg3[%c0_1, %c0_2] : memref<32x1xf32, #tpu.memory_space<vmem>>, vector<32x1xf32>
    %2 = vector.shape_cast %1 : vector<32x1xf32> to vector<32x1xf32>
    %3 = vector.broadcast %2 : vector<32x1xf32> to vector<32x128xf32>
    %c0_3 = arith.constant 0 : index
    %c0_4 = arith.constant 0 : index
    %4 = vector.load %arg5[%c0_3, %c0_4] : memref<32x1xf32, #tpu.memory_space<vmem>>, vector<32x1xf32>
    %5 = vector.shape_cast %4 : vector<32x1xf32> to vector<32x1xf32>
    %6 = vector.broadcast %5 : vector<32x1xf32> to vector<32x128xf32>
    %c0_5 = arith.constant 0 : index
    %c0_6 = arith.constant 0 : index
    %7 = vector.load %arg6[%c0_5, %c0_6] : memref<32x1xf32, #tpu.memory_space<vmem>>, vector<32x1xf32>
    %8 = vector.shape_cast %7 : vector<32x1xf32> to vector<32x1xf32>
    %9 = vector.broadcast %8 : vector<32x1xf32> to vector<32x128xf32>
    %c0_7 = arith.constant 0 : index
    %10 = memref.load %arg7[%c0_7] : memref<1xf32, #tpu.memory_space<smem>>
    %c0_8 = arith.constant 0 : index
    %c0_9 = arith.constant 0 : index
    %c0_10 = arith.constant 0 : index
    %11 = vector.load %arg2[%c0_8, %c0_9, %c0_10] : memref<1x32x128xf32, #tpu.memory_space<vmem>>, vector<1x32x128xf32>
    %12 = vector.shape_cast %11 : vector<1x32x128xf32> to vector<32x128xf32>
    %c0_i32 = arith.constant 0 : i32
    %c0_11 = arith.constant 0 : index
    %13 = arith.index_cast %c0_i32 : i32 to index
    %c0_12 = arith.constant 0 : index
    %c0_13 = arith.constant 0 : index
    %14 = vector.load %arg1[%c0_11, %13, %c0_12, %c0_13] : memref<1x8x1x128xf32, #tpu.memory_space<vmem>>, vector<1x1x1x128xf32>
    %15 = vector.shape_cast %14 : vector<1x1x1x128xf32> to vector<1x128xf32>
    %16 = vector.broadcast %15 : vector<1x128xf32> to vector<32x128xf32>
    %17 = arith.mulf %16, %3 : vector<32x128xf32>
    %18 = arith.addf %17, %6 : vector<32x128xf32>
    %cst = arith.constant dense<0.000000e+00> : vector<32x128xf32>
    %19 = tpu.matmul %0, %12, %cst {dimension_numbers = #tpu.dot_dimension_numbers<[1], [0], [0], [1], [0, 0, 1, 1], [], []>} : vector<32x32xf32>, vector<32x128xf32>, vector<32x128xf32> -> vector<32x128xf32>
    %20 = arith.addf %18, %19 : vector<32x128xf32>
    %21 = math.tanh %20 : vector<32x128xf32>
    %22 = arith.mulf %21, %9 : vector<32x128xf32>
    %cst_14 = arith.constant dense<0.000000e+00> : vector<128xf32>
    %23 = vector.multi_reduction <add>, %22, %cst_14 [0] : vector<32x128xf32> to vector<128xf32>
    %24 = vector.shape_cast %23 : vector<128xf32> to vector<1x128xf32>
    %25 = vector.broadcast %10 : f32 to vector<1x128xf32>
    %26 = arith.addf %24, %25 : vector<1x128xf32>
    %c0_15 = arith.constant 0 : index
    %27 = arith.index_cast %c0_i32 : i32 to index
    %c0_16 = arith.constant 0 : index
    %c0_17 = arith.constant 0 : index
    %28 = vector.load %arg8[%c0_15, %27, %c0_16, %c0_17] : memref<1x8x1x128xf32, #tpu.memory_space<vmem>>, vector<1x1x1x128xf32>
    %29 = vector.shape_cast %28 : vector<1x1x1x128xf32> to vector<1x128xf32>
    %30 = vector.shape_cast %26 : vector<1x128xf32> to vector<1x1x1x128xf32>
    tpu.vector_store %arg8[%c0_15, %27, %c0_16, %c0_17], %30 {strides = array<i32>} : memref<1x8x1x128xf32, #tpu.memory_space<vmem>>, vector<1x1x1x128xf32>,
    %c1_i32 = arith.constant 1 : i32
    %c0_18 = arith.constant 0 : index
    %31 = arith.index_cast %c1_i32 : i32 to index
    %c0_19 = arith.constant 0 : index
    %c0_20 = arith.constant 0 : index
    %32 = vector.load %arg1[%c0_18, %31, %c0_19, %c0_20] : memref<1x8x1x128xf32, #tpu.memory_space<vmem>>, vector<1x1x1x128xf32>
    %33 = vector.shape_cast %32 : vector<1x1x1x128xf32> to vector<1x128xf32>
    %34 = vector.broadcast %33 : vector<1x128xf32> to vector<32x128xf32>
    %35 = arith.mulf %34, %3 : vector<32x128xf32>
    %36 = arith.addf %35, %6 : vector<32x128xf32>
    %cst_21 = arith.constant dense<0.000000e+00> : vector<32x128xf32>
    %37 = tpu.matmul %0, %21, %cst_21 {dimension_numbers = #tpu.dot_dimension_numbers<[1], [0], [0], [1], [0, 0, 1, 1], [], []>} : vector<32x32xf32>, vector<32x128xf32>, vector<32x128xf32> -> vector<32x128xf32>
    %38 = arith.addf %36, %37 : vector<32x128xf32>
    %39 = math.tanh %38 : vector<32x128xf32>
    %40 = arith.mulf %39, %9 : vector<32x128xf32>
    %cst_22 = arith.constant dense<0.000000e+00> : vector<128xf32>
    %41 = vector.multi_reduction <add>, %40, %cst_22 [0] : vector<32x128xf32> to vector<128xf32>
    %42 = vector.shape_cast %41 : vector<128xf32> to vector<1x128xf32>
    %43 = vector.broadcast %10 : f32 to vector<1x128xf32>
    %44 = arith.addf %42, %43 : vector<1x128xf32>
    %c0_23 = arith.constant 0 : index
    %45 = arith.index_cast %c1_i32 : i32 to index
    %c0_24 = arith.constant 0 : index
    %c0_25 = arith.constant 0 : index
    %46 = vector.load %arg8[%c0_23, %45, %c0_24, %c0_25] : memref<1x8x1x128xf32, #tpu.memory_space<vmem>>, vector<1x1x1x128xf32>
    %47 = vector.shape_cast %46 : vector<1x1x1x128xf32> to vector<1x128xf32>
    %48 = vector.shape_cast %44 : vector<1x128xf32> to vector<1x1x1x128xf32>
    tpu.vector_store %arg8[%c0_23, %45, %c0_24, %c0_25], %48 {strides = array<i32>} : memref<1x8x1x128xf32, #tpu.memory_space<vmem>>, vector<1x1x1x128xf32>,
    %c2_i32 = arith.constant 2 : i32
    %c0_26 = arith.constant 0 : index
    %49 = arith.index_cast %c2_i32 : i32 to index
    %c0_27 = arith.constant 0 : index
    %c0_28 = arith.constant 0 : index
    %50 = vector.load %arg1[%c0_26, %49, %c0_27, %c0_28] : memref<1x8x1x128xf32, #tpu.memory_space<vmem>>, vector<1x1x1x128xf32>
    %51 = vector.shape_cast %50 : vector<1x1x1x128xf32> to vector<1x128xf32>
    %52 = vector.broadcast %51 : vector<1x128xf32> to vector<32x128xf32>
    %53 = arith.mulf %52, %3 : vector<32x128xf32>
    %54 = arith.addf %53, %6 : vector<32x128xf32>
    %cst_29 = arith.constant dense<0.000000e+00> : vector<32x128xf32>
    %55 = tpu.matmul %0, %39, %cst_29 {dimension_numbers = #tpu.dot_dimension_numbers<[1], [0], [0], [1], [0, 0, 1, 1], [], []>} : vector<32x32xf32>, vector<32x128xf32>, vector<32x128xf32> -> vector<32x128xf32>
    %56 = arith.addf %54, %55 : vector<32x128xf32>
    %57 = math.tanh %56 : vector<32x128xf32>
    %58 = arith.mulf %57, %9 : vector<32x128xf32>
    %cst_30 = arith.constant dense<0.000000e+00> : vector<128xf32>
    %59 = vector.multi_reduction <add>, %58, %cst_30 [0] : vector<32x128xf32> to vector<128xf32>
    %60 = vector.shape_cast %59 : vector<128xf32> to vector<1x128xf32>
    %61 = vector.broadcast %10 : f32 to vector<1x128xf32>
    %62 = arith.addf %60, %61 : vector<1x128xf32>
    %c0_31 = arith.constant 0 : index
    %63 = arith.index_cast %c2_i32 : i32 to index
    %c0_32 = arith.constant 0 : index
    %c0_33 = arith.constant 0 : index
    %64 = vector.load %arg8[%c0_31, %63, %c0_32, %c0_33] : memref<1x8x1x128xf32, #tpu.memory_space<vmem>>, vector<1x1x1x128xf32>
    %65 = vector.shape_cast %64 : vector<1x1x1x128xf32> to vector<1x128xf32>
    %66 = vector.shape_cast %62 : vector<1x128xf32> to vector<1x1x1x128xf32>
    tpu.vector_store %arg8[%c0_31, %63, %c0_32, %c0_33], %66 {strides = array<i32>} : memref<1x8x1x128xf32, #tpu.memory_space<vmem>>, vector<1x1x1x128xf32>,
    %c3_i32 = arith.constant 3 : i32
    %c0_34 = arith.constant 0 : index
    %67 = arith.index_cast %c3_i32 : i32 to index
    %c0_35 = arith.constant 0 : index
    %c0_36 = arith.constant 0 : index
    %68 = vector.load %arg1[%c0_34, %67, %c0_35, %c0_36] : memref<1x8x1x128xf32, #tpu.memory_space<vmem>>, vector<1x1x1x128xf32>
    %69 = vector.shape_cast %68 : vector<1x1x1x128xf32> to vector<1x128xf32>
    %70 = vector.broadcast %69 : vector<1x128xf32> to vector<32x128xf32>
    %71 = arith.mulf %70, %3 : vector<32x128xf32>
    %72 = arith.addf %71, %6 : vector<32x128xf32>
    %cst_37 = arith.constant dense<0.000000e+00> : vector<32x128xf32>
    %73 = tpu.matmul %0, %57, %cst_37 {dimension_numbers = #tpu.dot_dimension_numbers<[1], [0], [0], [1], [0, 0, 1, 1], [], []>} : vector<32x32xf32>, vector<32x128xf32>, vector<32x128xf32> -> vector<32x128xf32>
    %74 = arith.addf %72, %73 : vector<32x128xf32>
    %75 = math.tanh %74 : vector<32x128xf32>
    %76 = arith.mulf %75, %9 : vector<32x128xf32>
    %cst_38 = arith.constant dense<0.000000e+00> : vector<128xf32>
    %77 = vector.multi_reduction <add>, %76, %cst_38 [0] : vector<32x128xf32> to vector<128xf32>
    %78 = vector.shape_cast %77 : vector<128xf32> to vector<1x128xf32>
    %79 = vector.broadcast %10 : f32 to vector<1x128xf32>
    %80 = arith.addf %78, %79 : vector<1x128xf32>
    %c0_39 = arith.constant 0 : index
    %81 = arith.index_cast %c3_i32 : i32 to index
    %c0_40 = arith.constant 0 : index
    %c0_41 = arith.constant 0 : index
    %82 = vector.load %arg8[%c0_39, %81, %c0_40, %c0_41] : memref<1x8x1x128xf32, #tpu.memory_space<vmem>>, vector<1x1x1x128xf32>
    %83 = vector.shape_cast %82 : vector<1x1x1x128xf32> to vector<1x128xf32>
    %84 = vector.shape_cast %80 : vector<1x128xf32> to vector<1x1x1x128xf32>
    tpu.vector_store %arg8[%c0_39, %81, %c0_40, %c0_41], %84 {strides = array<i32>} : memref<1x8x1x128xf32, #tpu.memory_space<vmem>>, vector<1x1x1x128xf32>,
    %c4_i32 = arith.constant 4 : i32
    %c0_42 = arith.constant 0 : index
    %85 = arith.index_cast %c4_i32 : i32 to index
    %c0_43 = arith.constant 0 : index
    %c0_44 = arith.constant 0 : index
    %86 = vector.load %arg1[%c0_42, %85, %c0_43, %c0_44] : memref<1x8x1x128xf32, #tpu.memory_space<vmem>>, vector<1x1x1x128xf32>
    %87 = vector.shape_cast %86 : vector<1x1x1x128xf32> to vector<1x128xf32>
    %88 = vector.broadcast %87 : vector<1x128xf32> to vector<32x128xf32>
    %89 = arith.mulf %88, %3 : vector<32x128xf32>
    %90 = arith.addf %89, %6 : vector<32x128xf32>
    %cst_45 = arith.constant dense<0.000000e+00> : vector<32x128xf32>
    %91 = tpu.matmul %0, %75, %cst_45 {dimension_numbers = #tpu.dot_dimension_numbers<[1], [0], [0], [1], [0, 0, 1, 1], [], []>} : vector<32x32xf32>, vector<32x128xf32>, vector<32x128xf32> -> vector<32x128xf32>
    %92 = arith.addf %90, %91 : vector<32x128xf32>
    %93 = math.tanh %92 : vector<32x128xf32>
    %94 = arith.mulf %93, %9 : vector<32x128xf32>
    %cst_46 = arith.constant dense<0.000000e+00> : vector<128xf32>
    %95 = vector.multi_reduction <add>, %94, %cst_46 [0] : vector<32x128xf32> to vector<128xf32>
    %96 = vector.shape_cast %95 : vector<128xf32> to vector<1x128xf32>
    %97 = vector.broadcast %10 : f32 to vector<1x128xf32>
    %98 = arith.addf %96, %97 : vector<1x128xf32>
    %c0_47 = arith.constant 0 : index
    %99 = arith.index_cast %c4_i32 : i32 to index
    %c0_48 = arith.constant 0 : index
    %c0_49 = arith.constant 0 : index
    %100 = vector.load %arg8[%c0_47, %99, %c0_48, %c0_49] : memref<1x8x1x128xf32, #tpu.memory_space<vmem>>, vector<1x1x1x128xf32>
    %101 = vector.shape_cast %100 : vector<1x1x1x128xf32> to vector<1x128xf32>
    %102 = vector.shape_cast %98 : vector<1x128xf32> to vector<1x1x1x128xf32>
    tpu.vector_store %arg8[%c0_47, %99, %c0_48, %c0_49], %102 {strides = array<i32>} : memref<1x8x1x128xf32, #tpu.memory_space<vmem>>, vector<1x1x1x128xf32>,
    %c5_i32 = arith.constant 5 : i32
    %c0_50 = arith.constant 0 : index
    %103 = arith.index_cast %c5_i32 : i32 to index
    %c0_51 = arith.constant 0 : index
    %c0_52 = arith.constant 0 : index
    %104 = vector.load %arg1[%c0_50, %103, %c0_51, %c0_52] : memref<1x8x1x128xf32, #tpu.memory_space<vmem>>, vector<1x1x1x128xf32>
    %105 = vector.shape_cast %104 : vector<1x1x1x128xf32> to vector<1x128xf32>
    %106 = vector.broadcast %105 : vector<1x128xf32> to vector<32x128xf32>
    %107 = arith.mulf %106, %3 : vector<32x128xf32>
    %108 = arith.addf %107, %6 : vector<32x128xf32>
    %cst_53 = arith.constant dense<0.000000e+00> : vector<32x128xf32>
    %109 = tpu.matmul %0, %93, %cst_53 {dimension_numbers = #tpu.dot_dimension_numbers<[1], [0], [0], [1], [0, 0, 1, 1], [], []>} : vector<32x32xf32>, vector<32x128xf32>, vector<32x128xf32> -> vector<32x128xf32>
    %110 = arith.addf %108, %109 : vector<32x128xf32>
    %111 = math.tanh %110 : vector<32x128xf32>
    %112 = arith.mulf %111, %9 : vector<32x128xf32>
    %cst_54 = arith.constant dense<0.000000e+00> : vector<128xf32>
    %113 = vector.multi_reduction <add>, %112, %cst_54 [0] : vector<32x128xf32> to vector<128xf32>
    %114 = vector.shape_cast %113 : vector<128xf32> to vector<1x128xf32>
    %115 = vector.broadcast %10 : f32 to vector<1x128xf32>
    %116 = arith.addf %114, %115 : vector<1x128xf32>
    %c0_55 = arith.constant 0 : index
    %117 = arith.index_cast %c5_i32 : i32 to index
    %c0_56 = arith.constant 0 : index
    %c0_57 = arith.constant 0 : index
    %118 = vector.load %arg8[%c0_55, %117, %c0_56, %c0_57] : memref<1x8x1x128xf32, #tpu.memory_space<vmem>>, vector<1x1x1x128xf32>
    %119 = vector.shape_cast %118 : vector<1x1x1x128xf32> to vector<1x128xf32>
    %120 = vector.shape_cast %116 : vector<1x128xf32> to vector<1x1x1x128xf32>
    tpu.vector_store %arg8[%c0_55, %117, %c0_56, %c0_57], %120 {strides = array<i32>} : memref<1x8x1x128xf32, #tpu.memory_space<vmem>>, vector<1x1x1x128xf32>,
    %c6_i32 = arith.constant 6 : i32
    %c0_58 = arith.constant 0 : index
    %121 = arith.index_cast %c6_i32 : i32 to index
    %c0_59 = arith.constant 0 : index
    %c0_60 = arith.constant 0 : index
    %122 = vector.load %arg1[%c0_58, %121, %c0_59, %c0_60] : memref<1x8x1x128xf32, #tpu.memory_space<vmem>>, vector<1x1x1x128xf32>
    %123 = vector.shape_cast %122 : vector<1x1x1x128xf32> to vector<1x128xf32>
    %124 = vector.broadcast %123 : vector<1x128xf32> to vector<32x128xf32>
    %125 = arith.mulf %124, %3 : vector<32x128xf32>
    %126 = arith.addf %125, %6 : vector<32x128xf32>
    %cst_61 = arith.constant dense<0.000000e+00> : vector<32x128xf32>
    %127 = tpu.matmul %0, %111, %cst_61 {dimension_numbers = #tpu.dot_dimension_numbers<[1], [0], [0], [1], [0, 0, 1, 1], [], []>} : vector<32x32xf32>, vector<32x128xf32>, vector<32x128xf32> -> vector<32x128xf32>
    %128 = arith.addf %126, %127 : vector<32x128xf32>
    %129 = math.tanh %128 : vector<32x128xf32>
    %130 = arith.mulf %129, %9 : vector<32x128xf32>
    %cst_62 = arith.constant dense<0.000000e+00> : vector<128xf32>
    %131 = vector.multi_reduction <add>, %130, %cst_62 [0] : vector<32x128xf32> to vector<128xf32>
    %132 = vector.shape_cast %131 : vector<128xf32> to vector<1x128xf32>
    %133 = vector.broadcast %10 : f32 to vector<1x128xf32>
    %134 = arith.addf %132, %133 : vector<1x128xf32>
    %c0_63 = arith.constant 0 : index
    %135 = arith.index_cast %c6_i32 : i32 to index
    %c0_64 = arith.constant 0 : index
    %c0_65 = arith.constant 0 : index
    %136 = vector.load %arg8[%c0_63, %135, %c0_64, %c0_65] : memref<1x8x1x128xf32, #tpu.memory_space<vmem>>, vector<1x1x1x128xf32>
    %137 = vector.shape_cast %136 : vector<1x1x1x128xf32> to vector<1x128xf32>
    %138 = vector.shape_cast %134 : vector<1x128xf32> to vector<1x1x1x128xf32>
    tpu.vector_store %arg8[%c0_63, %135, %c0_64, %c0_65], %138 {strides = array<i32>} : memref<1x8x1x128xf32, #tpu.memory_space<vmem>>, vector<1x1x1x128xf32>,
    %c7_i32 = arith.constant 7 : i32
    %c0_66 = arith.constant 0 : index
    %139 = arith.index_cast %c7_i32 : i32 to index
    %c0_67 = arith.constant 0 : index
    %c0_68 = arith.constant 0 : index
    %140 = vector.load %arg1[%c0_66, %139, %c0_67, %c0_68] : memref<1x8x1x128xf32, #tpu.memory_space<vmem>>, vector<1x1x1x128xf32>
    %141 = vector.shape_cast %140 : vector<1x1x1x128xf32> to vector<1x128xf32>
    %142 = vector.broadcast %141 : vector<1x128xf32> to vector<32x128xf32>
    %143 = arith.mulf %142, %3 : vector<32x128xf32>
    %144 = arith.addf %143, %6 : vector<32x128xf32>
    %cst_69 = arith.constant dense<0.000000e+00> : vector<32x128xf32>
    %145 = tpu.matmul %0, %129, %cst_69 {dimension_numbers = #tpu.dot_dimension_numbers<[1], [0], [0], [1], [0, 0, 1, 1], [], []>} : vector<32x32xf32>, vector<32x128xf32>, vector<32x128xf32> -> vector<32x128xf32>
    %146 = arith.addf %144, %145 : vector<32x128xf32>
    %147 = math.tanh %146 : vector<32x128xf32>
    %148 = arith.mulf %147, %9 : vector<32x128xf32>
    %cst_70 = arith.constant dense<0.000000e+00> : vector<128xf32>
    %149 = vector.multi_reduction <add>, %148, %cst_70 [0] : vector<32x128xf32> to vector<128xf32>
    %150 = vector.shape_cast %149 : vector<128xf32> to vector<1x128xf32>
    %151 = vector.broadcast %10 : f32 to vector<1x128xf32>
    %152 = arith.addf %150, %151 : vector<1x128xf32>
    %c0_71 = arith.constant 0 : index
    %153 = arith.index_cast %c7_i32 : i32 to index
    %c0_72 = arith.constant 0 : index
    %c0_73 = arith.constant 0 : index
    %154 = vector.load %arg8[%c0_71, %153, %c0_72, %c0_73] : memref<1x8x1x128xf32, #tpu.memory_space<vmem>>, vector<1x1x1x128xf32>
    %155 = vector.shape_cast %154 : vector<1x1x1x128xf32> to vector<1x128xf32>
    %156 = vector.shape_cast %152 : vector<1x128xf32> to vector<1x1x1x128xf32>
    tpu.vector_store %arg8[%c0_71, %153, %c0_72, %c0_73], %156 {strides = array<i32>} : memref<1x8x1x128xf32, #tpu.memory_space<vmem>>, vector<1x1x1x128xf32>,
    %c8_i32 = arith.constant 8 : i32
    %c0_74 = arith.constant 0 : index
    %c0_75 = arith.constant 0 : index
    %c0_76 = arith.constant 0 : index
    %157 = vector.load %arg9[%c0_74, %c0_75, %c0_76] : memref<1x32x128xf32, #tpu.memory_space<vmem>>, vector<1x32x128xf32>
    %158 = vector.shape_cast %157 : vector<1x32x128xf32> to vector<32x128xf32>
    %159 = vector.shape_cast %147 : vector<32x128xf32> to vector<1x32x128xf32>
    tpu.vector_store %arg9[%c0_74, %c0_75, %c0_76], %159 {strides = array<i32>} : memref<1x32x128xf32, #tpu.memory_space<vmem>>, vector<1x32x128xf32>,
    return
  }
  func.func @transform_0(%arg0: i32) -> (i32, i32, i32, i32) {
    %c0_i32 = arith.constant 0 : i32
    %c0_i32_0 = arith.constant 0 : i32
    %c0_i32_1 = arith.constant 0 : i32
    %c0_i32_2 = arith.constant 0 : i32
    return %arg0, %c0_i32, %c0_i32_0, %c0_i32_1 : i32, i32, i32, i32
  }
  func.func @transform_1(%arg0: i32) -> (i32, i32, i32) {
    %c0_i32 = arith.constant 0 : i32
    %c0_i32_0 = arith.constant 0 : i32
    %c0_i32_1 = arith.constant 0 : i32
    return %arg0, %c0_i32, %c0_i32_0 : i32, i32, i32
  }
  func.func @transform_2(%arg0: i32) -> (i32, i32) {
    %c0_i32 = arith.constant 0 : i32
    %c0_i32_0 = arith.constant 0 : i32
    %c0_i32_1 = arith.constant 0 : i32
    return %c0_i32, %c0_i32_0 : i32, i32
  }
  func.func @transform_3(%arg0: i32) -> (i32, i32) {
    %c0_i32 = arith.constant 0 : i32
    %c0_i32_0 = arith.constant 0 : i32
    %c0_i32_1 = arith.constant 0 : i32
    return %c0_i32, %c0_i32_0 : i32, i32
  }
  func.func @transform_4(%arg0: i32) -> (i32, i32) {
    %c0_i32 = arith.constant 0 : i32
    %c0_i32_0 = arith.constant 0 : i32
    %c0_i32_1 = arith.constant 0 : i32
    return %c0_i32, %c0_i32_0 : i32, i32
  }
  func.func @transform_5(%arg0: i32) -> (i32, i32) {
    %c0_i32 = arith.constant 0 : i32
    %c0_i32_0 = arith.constant 0 : i32
    %c0_i32_1 = arith.constant 0 : i32
    return %c0_i32, %c0_i32_0 : i32, i32
  }
  func.func @transform_6(%arg0: i32) -> i32 {
    %c0_i32 = arith.constant 0 : i32
    %c0_i32_0 = arith.constant 0 : i32
    return %c0_i32 : i32
  }
  func.func @transform_7(%arg0: i32) -> (i32, i32, i32, i32) {
    %c0_i32 = arith.constant 0 : i32
    %c0_i32_0 = arith.constant 0 : i32
    %c0_i32_1 = arith.constant 0 : i32
    %c0_i32_2 = arith.constant 0 : i32
    return %arg0, %c0_i32, %c0_i32_0, %c0_i32_1 : i32, i32, i32, i32
  }
  func.func @transform_8(%arg0: i32) -> (i32, i32, i32) {
    %c0_i32 = arith.constant 0 : i32
    %c0_i32_0 = arith.constant 0 : i32
    %c0_i32_1 = arith.constant 0 : i32
    return %arg0, %c0_i32, %c0_i32_0 : i32, i32, i32
  }
}

</mosaic_0001>

<bundles_post_ra>
// kernel: tpu_custom_call.1
= control target key start
LH: loop header
LB: loop body
LE: loop exit
PB: predicated region body
PF: predicated region fallthrough
CT: control target
= control target key end

     0   :  { %15 = vsyncpa [#allocation4], 0  ;;  %vm127_vm0 = vcmask 261120   ;;  %v1568_v6 = vmov 0   ;;  %s1957_s0 = inlined_call_operand.vmem [shape: f32[1,8,1,128], index: 0, kind: input, shape index: {}]   ;;  %s1958_s1 = inlined_call_operand.vmem [shape: f32[1,32,128], index: 1, kind: input, shape index: {}]   ;;  %s1959_s2 = inlined_call_operand.vmem [shape: f32[32,1], index: 2, kind: input, shape index: {}]   ;;  %s1960_s3 = inlined_call_operand.vmem [shape: f32[32,32], index: 3, kind: input, shape index: {}]   ;;  %s1961_s4 = inlined_call_operand.vmem [shape: f32[32,1], index: 4, kind: input, shape index: {}]   ;;  %s1962_s5 = inlined_call_operand.vmem [shape: f32[32,1], index: 5, kind: input, shape index: {}]   ;;  %s1963_s6 = inlined_call_operand.<no memory space> [shape: f32[1], index: 6, kind: input, shape index: {}]   ;;  %s1964_s7 = inlined_call_operand.hbm [shape: f32[1,8,1,128], index: 7, kind: output, shape index: {0}]   ;;  %s1965_s8 = inlined_call_operand.hbm [shape: f32[1,32,128], index: 8, kind: output, shape index: {1}]  }
   0x1   :  { %v108_v0 = vld [vmem:[%s1958_s1] sm:$0xff]  ;;  %v109_v1 = vld [vmem:[%s1958_s1 + $0x8] sm:$0xff]  ;;  %v110_v2 = vld [vmem:[%s1958_s1 + $0x10] sm:$0xff]  ;;  %1455 = vset.pattern.permute.xlu1 %v1568_v6  ;;  %1454 = vset.pattern.permute.xlu0 %v1568_v6 }
   0x2   :  { %v1383_v3 = vpack.c.bf16 %v109_v1, %v108_v0  ;;  %v111_v4 = vld [vmem:[%s1958_s1 + $0x18] sm:$0xff]  ;;  %v1635_v5 = vld [vmem:[%s1960_s3] sm:$0xff]  ;;  %v60_v10 = vld [vmem:[%s1961_s4 + $0x8] sm:$0xff] }
   0x3   :  { %v1387_v7 = vpack.c.bf16 %v111_v4, %v110_v2  ;;  %1279 = vmatprep.mubr.msk.f32.mxu0 %vm127_vm0, %v1635_v5  ;;  %v59_v8 = vld [vmem:[%s1961_s4] sm:$0xff]  ;;  %1293 = vmatprep.mubr.msk.f32.mxu1 %vm127_vm0, %v1635_v5  ;;  %v36_v11 = vld [vmem:[%s1959_s2 + $0x8] sm:$0xff] }
   0x4   :  { %1384 = vmatprep.subr.bf16.mxu0 %v1383_v3  ;;  %65 = vperm.xlu1 %1455, %v59_v8   ;;  %v35_v9 = vld [vmem:[%s1959_s2] sm:$0xff] }
   0x5   :  { %1386 = vmatpush3.bf16.msra.mxu0 %v1383_v3  ;;  %41 = vperm.xlu0 %1454, %v35_v9  }
   0x6   :  { %1388 = vmatprep.subr.bf16.mxu0 %v1387_v7 }
   0x7   :  { %16 = vsyncpa [#allocation6], 0  ;;  %v1656_v12 = vld [vmem:[%s1960_s3 + $0x8] sm:$0xff]  ;;  %v38_v13 = vld [vmem:[%s1959_s2 + $0x18] sm:$0xff] }
   0x8   :  { %70 = vperm.xlu1 %1455, %v60_v10   ;;  %v1664_v14 = vld [vmem:[%s1960_s3 + $0x10] sm:$0xff]  ;;  %v1676_v16 = vld [vmem:[%s1960_s3 + $0x18] sm:$0xff]  ;;  %v84_v19 = vld [vmem:[%s1962_s5 + $0x8] sm:$0xff] }
   0x9   :  { %1390 = vmatpush3.bf16.msra.mxu0 %v1387_v7  ;;  %46 = vperm.xlu0 %1454, %v36_v11   ;;  %v37_v15 = vld [vmem:[%s1959_s2 + $0x10] sm:$0xff]  ;;  %v62_v17 = vld [vmem:[%s1961_s4 + $0x18] sm:$0xff]  ;;  %v83_v20 = vld [vmem:[%s1962_s5] sm:$0xff] }
   0xa   :  { %v61_v18 = vld [vmem:[%s1961_s4 + $0x10] sm:$0xff]  ;;  %v86_v21 = vld [vmem:[%s1962_s5 + $0x18] sm:$0xff]  ;;  %v1166_v23 = vld [vmem:[%s1957_s0 + $0x1] ss:$0 sm:$0xff] }
   0xb   :  { %v85_v22 = vld [vmem:[%s1962_s5 + $0x10] sm:$0xff]  ;;  %v1172_v24 = vld [vmem:[%s1957_s0 + $0x2] ss:$0 sm:$0xff]  ;;  %v1178_v25 = vld [vmem:[%s1957_s0 + $0x3] ss:$0 sm:$0xff] }
   0xc   :  { %1280 = vmatmul.mubr.msk.f32.vlgmr.msra.gmra.mrb[0].mxu0 %vm127_vm0, %v1656_v12  ;;  %56 = vperm.xlu1 %1455, %v38_v13   ;;  %v1184_v26 = vld [vmem:[%s1957_s0 + $0x4] ss:$0 sm:$0xff]  ;;  %v1190_v28 = vld [vmem:[%s1957_s0 + $0x5] ss:$0 sm:$0xff]  ;;  %v1196_v29 = vld [vmem:[%s1957_s0 + $0x6] ss:$0 sm:$0xff] }
   0xd   :  { %1282 = vmatprep.mubr.msk.f32.mxu0 %vm127_vm0, %v1664_v14  ;;  %51 = vperm.xlu0 %1454, %v37_v15   ;;  %v1202_v30 = vld [vmem:[%s1957_s0 + $0x7] ss:$0 sm:$0xff] }
  0x10   :  { %1283 = vmatmul.mubr.msk.f32.gmra.mrb[2].mxu0 %vm127_vm0, %v1676_v16  ;;  %80 = vperm.xlu1 %1455, %v62_v17  }
  0x11   :  { %75 = vperm.xlu0 %1454, %v61_v18   ;;  %1307 = vmatprep.mubr.msk.f32.mxu0 %vm127_vm0, %v1635_v5 }
  0x14   :  { %94 = vperm.xlu1 %1455, %v84_v19  }
  0x15   :  { %89 = vperm.xlu0 %1454, %v83_v20  }
  0x18   :  { %104 = vperm.xlu1 %1455, %v86_v21  }
  0x19   :  { %99 = vperm.xlu0 %1454, %v85_v22  }
  0x83   :  { %v1712_v27 = vpop.permute.xlu1 %65 }
  0x84   :  { %v1723_v31 = vpop.permute.xlu0 %41 }
  0x85   :  { %v257_v32 = vmul.f32 %v1166_v23, %v1723_v31  ;;  %v382_v33 = vmul.f32 %v1172_v24, %v1723_v31  ;;  %v507_v34 = vmul.f32 %v1178_v25, %v1723_v31  ;;  %v632_v35 = vmul.f32 %v1184_v26, %v1723_v31 }
  0x86   :  { %v757_v36 = vmul.f32 %v1190_v28, %v1723_v31  ;;  %v882_v37 = vmul.f32 %v1196_v29, %v1723_v31  ;;  %v1007_v38 = vmul.f32 %v1202_v30, %v1723_v31 }
  0x87   :  { %v71_v39 = vpop.permute.xlu1 %70  ;;  %v1733_v40 = vadd.f32 %v257_v32, %v1712_v27  ;;  %v1736_v41 = vadd.f32 %v382_v33, %v1712_v27  ;;  %v1739_v42 = vadd.f32 %v507_v34, %v1712_v27  ;;  %v1742_v44 = vadd.f32 %v632_v35, %v1712_v27 }
  0x88   :  { %v47_v43 = vpop.permute.xlu0 %46  ;;  %v1745_v45 = vadd.f32 %v757_v36, %v1712_v27  ;;  %v1748_v46 = vadd.f32 %v882_v37, %v1712_v27  ;;  %v1751_v47 = vadd.f32 %v1007_v38, %v1712_v27  ;;  %v1160_v38 = vld [vmem:[%s1957_s0] ss:$0 sm:$0xff] }
  0x89   :  { %v258_v48 = vmul.f32 %v1166_v23, %v47_v43  ;;  %v383_v49 = vmul.f32 %v1172_v24, %v47_v43  ;;  %v508_v50 = vmul.f32 %v1178_v25, %v47_v43  ;;  %v633_v51 = vmul.f32 %v1184_v26, %v47_v43 }
  0x8a   :  { %v758_v52 = vmul.f32 %v1190_v28, %v47_v43  ;;  %v883_v57 = vmul.f32 %v1196_v29, %v47_v43  ;;  %v1008_v1 = vmul.f32 %v1202_v30, %v47_v43 }
  0x8b   :  { %v57_v53 = vpop.permute.xlu1 %56  ;;  %v1753_v54 = vadd.f32 %v258_v48, %v71_v39  ;;  %v1755_v55 = vadd.f32 %v383_v49, %v71_v39  ;;  %v1757_v56 = vadd.f32 %v508_v50, %v71_v39  ;;  %v1759_v2 = vadd.f32 %v633_v51, %v71_v39 }
  0x8c   :  { %v52_v58 = vpop.permute.xlu0 %51  ;;  %v260_v59 = vmul.f32 %v1166_v23, %v57_v53  ;;  %v385_v60 = vmul.f32 %v1172_v24, %v57_v53  ;;  %v510_v61 = vmul.f32 %v1178_v25, %v57_v53  ;;  %v635_v3 = vmul.f32 %v1184_v26, %v57_v53 }
  0x8d   :  { %v259_v62 = vmul.f32 %v1166_v23, %v52_v58  ;;  %v384_v63 = vmul.f32 %v1172_v24, %v52_v58  ;;  %v509_v0 = vmul.f32 %v1178_v25, %v52_v58  ;;  %v634_v4 = vmul.f32 %v1184_v26, %v52_v58 }
  0x8e   :  { %v1761_v6 = vadd.f32 %v758_v52, %v71_v39  ;;  %v760_v8 = vmul.f32 %v1190_v28, %v57_v53  ;;  %v759_v9 = vmul.f32 %v1190_v28, %v52_v58  ;;  %v1763_v10 = vadd.f32 %v883_v57, %v71_v39 }
  0x8f   :  { %v81_v7 = vpop.permute.xlu1 %80  ;;  %v885_v11 = vmul.f32 %v1196_v29, %v57_v53  ;;  %v884_v28 = vmul.f32 %v1196_v29, %v52_v58  ;;  %v1787_v32 = vadd.f32 %v1008_v1, %v71_v39  ;;  %v1010_v33 = vmul.f32 %v1202_v30, %v57_v53 }
  0x90   :  { %v76_v13 = vpop.permute.xlu0 %75  ;;  %v1765_v15 = vadd.f32 %v260_v59, %v81_v7  ;;  %v1767_v17 = vadd.f32 %v385_v60, %v81_v7  ;;  %v1769_v18 = vadd.f32 %v510_v61, %v81_v7  ;;  %v1777_v22 = vadd.f32 %v635_v3, %v81_v7 }
  0x91   :  { %v1771_v19 = vadd.f32 %v259_v62, %v76_v13  ;;  %v1773_v20 = vadd.f32 %v384_v63, %v76_v13  ;;  %v1775_v21 = vadd.f32 %v509_v0, %v76_v13  ;;  %v1779_v23 = vadd.f32 %v634_v4, %v76_v13 }
  0x92   :  { %v1781_v24 = vadd.f32 %v760_v8, %v81_v7  ;;  %v1783_v25 = vadd.f32 %v759_v9, %v76_v13  ;;  %v1785_v26 = vadd.f32 %v885_v11, %v81_v7  ;;  %v1009_v34 = vmul.f32 %v1202_v30, %v52_v58 }
  0x93   :  { %v1789_v35 = vadd.f32 %v884_v28, %v76_v13  ;;  %v1791_v36 = vadd.f32 %v1010_v33, %v81_v7  ;;  %v120_v48 = vmul.f32 %v1160_v38, %v47_v43  ;;  %v119_v49 = vmul.f32 %v1160_v38, %v1723_v31  ;;  %v1802_v43 = vpop.permute.xlu1 %94 }
  0x94   :  { %v1793_v37 = vadd.f32 %v1009_v34, %v76_v13  ;;  %v122_v51 = vmul.f32 %v1160_v38, %v57_v53  ;;  %v121_v57 = vmul.f32 %v1160_v38, %v52_v58  ;;  %v1800_v31 = vpop.permute.xlu0 %89 }
  0x95   :  { %v124_v50 = vadd.f32 %v120_v48, %v71_v39  ;;  %v123_v52 = vadd.f32 %v119_v49, %v1712_v27 }
  0x96   :  { %v126_v61 = vadd.f32 %v122_v51, %v81_v7  ;;  %v125_v63 = vadd.f32 %v121_v57, %v76_v13  ;;  %v1823_v57 = vstv %s1963_s6  ;;  %s1569_s6 = smov [#allocation5]  }
  0x97   :  { %v1809_v33 = vpop.permute.xlu1 %104  ;;  %s1145_s12 = sshll.u32 %s1569_s6, 4  ;;  %s1146_s12 = int_to_ptr.vmem [resolvable:$true] %s1145_s12 }
  0x98   :  { %v1806_v11 = vpop.permute.xlu0 %99  ;;  %s1520_s13 = scalar_lea.vmem %s1146_s12, 512  ;;  %p1525_p1 = scmp.lt.s32.totalorder %s1146_s12, %s1146_s12 }
  0x99   :  { %p1521_p0 = scmp.ne.s32.totalorder %s1146_s12, %s1520_s13  ;;  %p1526_p2 = scmp.lt.s32.totalorder %s1520_s13, %s1520_s13 }
  0x9b   :  { %p1527_p3 = por %p1526_p2, %p1525_p1 }
  0x9d   :  { %p1528_p4 = pnand %p1527_p3, %p1521_p0 }
  0xdf   :  { %v1281_v29 = vpop.f32.mrb[0].mxu0 }
  0xe0   :  { %v226_v30 = vadd.f32 %v1281_v29, %v124_v50  ;;  %v206_v59 = vpop.f32.mrb[1].mxu0 }
  0xe1   :  { %v225_v60 = vadd.f32 %v206_v59, %v123_v52 }
  0xe2   :  { %1456 = vtanh.f32 %v226_v30 }
  0xe3   :  { %1458 = vtanh.f32 %v225_v60  ;;  %v1284_v62 = vpop.f32.mrb[2].mxu0 }
  0xe4   :  { %v228_v0 = vadd.f32 %v1284_v62, %v126_v61  ;;  %v216_v1 = vpop.f32.mrb[3].mxu0 }
  0xe5   :  { %v227_v3 = vadd.f32 %v216_v1, %v125_v63 }
  0xe6   :  { %1460 = vtanh.f32 %v228_v0 }
  0xe7   :  { %1462 = vtanh.f32 %v227_v3 }
  0xec   :  { %v1457_v39 = vpop.eup %1456 }
  0xed   :  { %v1459_v27 = vpop.eup %1458  ;;  %v234_v53 = vmul.f32 %v1457_v39, %v1802_v43 }
  0xee   :  { %v233_v58 = vmul.f32 %v1459_v27, %v1800_v31  ;;  %v1391_v4 = vpack.c.bf16 %v1457_v39, %v1459_v27 }
  0xf0   :  { %v1461_v7 = vpop.eup %1460  ;;  %v237_v8 = vadd.f32 %v234_v53, %v233_v58  ;;  %1392 = vmatprep.subr.bf16.mxu1 %v1391_v4 }
  0xf1   :  { %v1463_v9 = vpop.eup %1462  ;;  %1394 = vmatpush3.bf16.msra.mxu1 %v1391_v4  ;;  %v236_v34 = vmul.f32 %v1461_v7, %v1809_v33 }
  0xf2   :  { %v235_v13 = vmul.f32 %v1463_v9, %v1806_v11  ;;  %v1395_v28 = vpack.c.bf16 %v1461_v7, %v1463_v9 }
  0xf4   :  { %v238_v38 = vadd.f32 %v237_v8, %v235_v13  ;;  %1396 = vmatprep.subr.bf16.mxu1 %v1395_v28 }
  0xf5   :  { %1398 = vmatpush3.bf16.msra.mxu1 %v1395_v28 }
  0xf6   :  { %v239_v48 = vadd.f32 %v238_v38, %v236_v34 }
  0xf8   :  { %v240_v49 = vrot.slane %v239_v48, 4  ;;  %1294 = vmatmul.mubr.msk.f32.vlgmr.msra.gmra.mrb[0].mxu1 %vm127_vm0, %v1656_v12 }
  0xf9   :  { %1296 = vmatprep.mubr.msk.f32.mxu1 %vm127_vm0, %v1664_v14 }
  0xfa   :  { %v241_v50 = vadd.f32 %v240_v49, %v239_v48 }
  0xfc   :  { %v242_v51 = vrot.slane %v241_v50, 2  ;;  %1297 = vmatmul.mubr.msk.f32.gmra.mrb[2].mxu1 %vm127_vm0, %v1676_v16 }
  0xfd   :  { %1321 = vmatprep.mubr.msk.f32.mxu1 %vm127_vm0, %v1635_v5 }
  0xfe   :  { %v243_v29 = vadd.f32 %v242_v51, %v241_v50 }
 0x100   :  { %v244_v52 = vrot.slane %v243_v29, 1 }
 0x102   :  { %v245_v30 = vadd.f32 %v244_v52, %v243_v29 }
 0x104   :  { %v247_v59 = vadd.f32 %v1823_v57, %v245_v30 }
 0x106   :  { %248 = vst [vmem:[#allocation3] sm:$0x1] %v247_v59 }
 0x1cb   :  { %v1295_v60 = vpop.f32.mrb[0].mxu1 }
 0x1cc   :  { %v351_v61 = vadd.f32 %v1295_v60, %v1753_v54  ;;  %v331_v62 = vpop.f32.mrb[1].mxu1 }
 0x1cd   :  { %v350_v63 = vadd.f32 %v331_v62, %v1733_v40 }
 0x1ce   :  { %1464 = vtanh.f32 %v351_v61 }
 0x1cf   :  { %1466 = vtanh.f32 %v350_v63  ;;  %v1298_v0 = vpop.f32.mrb[2].mxu1 }
 0x1d0   :  { %v353_v1 = vadd.f32 %v1298_v0, %v1765_v15  ;;  %v341_v3 = vpop.f32.mrb[3].mxu1 }
 0x1d1   :  { %v352_v39 = vadd.f32 %v341_v3, %v1771_v19 }
 0x1d2   :  { %1468 = vtanh.f32 %v353_v1 }
 0x1d3   :  { %1470 = vtanh.f32 %v352_v39 }
 0x1d8   :  { %v1465_v27 = vpop.eup %1464 }
 0x1d9   :  { %v1467_v53 = vpop.eup %1466  ;;  %v359_v58 = vmul.f32 %v1465_v27, %v1802_v43 }
 0x1da   :  { %v358_v4 = vmul.f32 %v1467_v53, %v1800_v31  ;;  %v1399_v54 = vpack.c.bf16 %v1465_v27, %v1467_v53 }
 0x1dc   :  { %v1469_v7 = vpop.eup %1468  ;;  %v362_v8 = vadd.f32 %v359_v58, %v358_v4  ;;  %1400 = vmatprep.subr.bf16.mxu0 %v1399_v54 }
 0x1dd   :  { %v1471_v40 = vpop.eup %1470  ;;  %1402 = vmatpush3.bf16.msra.mxu0 %v1399_v54  ;;  %v361_v13 = vmul.f32 %v1469_v7, %v1809_v33 }
 0x1de   :  { %v360_v9 = vmul.f32 %v1471_v40, %v1806_v11  ;;  %v1403_v15 = vpack.c.bf16 %v1469_v7, %v1471_v40 }
 0x1e0   :  { %v363_v19 = vadd.f32 %v362_v8, %v360_v9  ;;  %1404 = vmatprep.subr.bf16.mxu0 %v1403_v15 }
 0x1e1   :  { %1406 = vmatpush3.bf16.msra.mxu0 %v1403_v15 }
 0x1e2   :  { %v364_v28 = vadd.f32 %v363_v19, %v361_v13 }
 0x1e4   :  { %v365_v34 = vrot.slane %v364_v28, 4  ;;  %1308 = vmatmul.mubr.msk.f32.vlgmr.msra.gmra.mrb[4].mxu0 %vm127_vm0, %v1656_v12 }
 0x1e5   :  { %1310 = vmatprep.mubr.msk.f32.mxu0 %vm127_vm0, %v1664_v14 }
 0x1e6   :  { %v366_v38 = vadd.f32 %v365_v34, %v364_v28 }
 0x1e8   :  { %v367_v48 = vrot.slane %v366_v38, 2  ;;  %1311 = vmatmul.mubr.msk.f32.gmra.mrb[6].mxu0 %vm127_vm0, %v1676_v16 }
 0x1e9   :  { %1335 = vmatprep.mubr.msk.f32.mxu0 %vm127_vm0, %v1635_v5 }
 0x1ea   :  { %v368_v49 = vadd.f32 %v367_v48, %v366_v38 }
 0x1ec   :  { %v369_v50 = vrot.slane %v368_v49, 1 }
 0x1ee   :  { %v370_v51 = vadd.f32 %v369_v50, %v368_v49 }
 0x1f0   :  { %v371_v29 = vadd.f32 %v370_v51, %v1823_v57 }
 0x1f2   :  { %373 = vst [vmem:[#allocation3 + $0x1] sm:$0x1] %v371_v29 }
 0x2b7   :  { %v1309_v52 = vpop.f32.mrb[4].mxu0 }
 0x2b8   :  { %v476_v30 = vadd.f32 %v1309_v52, %v1755_v55  ;;  %v456_v59 = vpop.f32.mrb[5].mxu0 }
 0x2b9   :  { %v475_v60 = vadd.f32 %v456_v59, %v1736_v41 }
 0x2ba   :  { %1472 = vtanh.f32 %v476_v30 }
 0x2bb   :  { %1474 = vtanh.f32 %v475_v60  ;;  %v1312_v61 = vpop.f32.mrb[6].mxu0 }
 0x2bc   :  { %v478_v62 = vadd.f32 %v1312_v61, %v1767_v17  ;;  %v466_v63 = vpop.f32.mrb[7].mxu0 }
 0x2bd   :  { %v477_v0 = vadd.f32 %v466_v63, %v1773_v20 }
 0x2be   :  { %1476 = vtanh.f32 %v478_v62 }
 0x2bf   :  { %1478 = vtanh.f32 %v477_v0 }
 0x2c4   :  { %v1473_v1 = vpop.eup %1472 }
 0x2c5   :  { %v1475_v3 = vpop.eup %1474  ;;  %v484_v39 = vmul.f32 %v1473_v1, %v1802_v43 }
 0x2c6   :  { %v483_v27 = vmul.f32 %v1475_v3, %v1800_v31  ;;  %v1407_v55 = vpack.c.bf16 %v1473_v1, %v1475_v3 }
 0x2c8   :  { %v1477_v53 = vpop.eup %1476  ;;  %v487_v58 = vadd.f32 %v484_v39, %v483_v27  ;;  %1408 = vmatprep.subr.bf16.mxu1 %v1407_v55 }
 0x2c9   :  { %v1479_v41 = vpop.eup %1478  ;;  %1410 = vmatpush3.bf16.msra.mxu1 %v1407_v55  ;;  %v486_v54 = vmul.f32 %v1477_v53, %v1809_v33 }
 0x2ca   :  { %v485_v4 = vmul.f32 %v1479_v41, %v1806_v11  ;;  %v1411_v17 = vpack.c.bf16 %v1477_v53, %v1479_v41 }
 0x2cc   :  { %v488_v20 = vadd.f32 %v487_v58, %v485_v4  ;;  %1412 = vmatprep.subr.bf16.mxu1 %v1411_v17 }
 0x2cd   :  { %1414 = vmatpush3.bf16.msra.mxu1 %v1411_v17 }
 0x2ce   :  { %v489_v7 = vadd.f32 %v488_v20, %v486_v54 }
 0x2d0   :  { %v490_v8 = vrot.slane %v489_v7, 4  ;;  %1322 = vmatmul.mubr.msk.f32.vlgmr.msra.gmra.mrb[4].mxu1 %vm127_vm0, %v1656_v12 }
 0x2d1   :  { %1324 = vmatprep.mubr.msk.f32.mxu1 %vm127_vm0, %v1664_v14 }
 0x2d2   :  { %v491_v40 = vadd.f32 %v490_v8, %v489_v7 }
 0x2d4   :  { %v492_v9 = vrot.slane %v491_v40, 2  ;;  %1325 = vmatmul.mubr.msk.f32.gmra.mrb[6].mxu1 %vm127_vm0, %v1676_v16 }
 0x2d5   :  { %1349 = vmatprep.mubr.msk.f32.mxu1 %vm127_vm0, %v1635_v5 }
 0x2d6   :  { %v493_v15 = vadd.f32 %v492_v9, %v491_v40 }
 0x2d8   :  { %v494_v13 = vrot.slane %v493_v15, 1 }
 0x2da   :  { %v495_v19 = vadd.f32 %v494_v13, %v493_v15 }
 0x2dc   :  { %v496_v28 = vadd.f32 %v495_v19, %v1823_v57 }
 0x2de   :  { %498 = vst [vmem:[#allocation3 + $0x2] sm:$0x1] %v496_v28 }
 0x3a3   :  { %v1323_v34 = vpop.f32.mrb[4].mxu1 }
 0x3a4   :  { %v601_v38 = vadd.f32 %v1323_v34, %v1757_v56  ;;  %v581_v48 = vpop.f32.mrb[5].mxu1 }
 0x3a5   :  { %v600_v49 = vadd.f32 %v581_v48, %v1739_v42 }
 0x3a6   :  { %1480 = vtanh.f32 %v601_v38 }
 0x3a7   :  { %1482 = vtanh.f32 %v600_v49  ;;  %v1326_v50 = vpop.f32.mrb[6].mxu1 }
 0x3a8   :  { %v603_v51 = vadd.f32 %v1326_v50, %v1769_v18  ;;  %v591_v29 = vpop.f32.mrb[7].mxu1 }
 0x3a9   :  { %v602_v52 = vadd.f32 %v591_v29, %v1775_v21 }
 0x3aa   :  { %1484 = vtanh.f32 %v603_v51 }
 0x3ab   :  { %1486 = vtanh.f32 %v602_v52 }
 0x3b0   :  { %v1481_v30 = vpop.eup %1480 }
 0x3b1   :  { %v1483_v59 = vpop.eup %1482  ;;  %v609_v60 = vmul.f32 %v1481_v30, %v1802_v43 }
 0x3b2   :  { %v608_v61 = vmul.f32 %v1483_v59, %v1800_v31  ;;  %v1415_v56 = vpack.c.bf16 %v1481_v30, %v1483_v59 }
 0x3b4   :  { %v1485_v62 = vpop.eup %1484  ;;  %v612_v63 = vadd.f32 %v609_v60, %v608_v61  ;;  %1416 = vmatprep.subr.bf16.mxu0 %v1415_v56 }
 0x3b5   :  { %v1487_v42 = vpop.eup %1486  ;;  %1418 = vmatpush3.bf16.msra.mxu0 %v1415_v56  ;;  %v611_v1 = vmul.f32 %v1485_v62, %v1809_v33 }
 0x3b6   :  { %v610_v0 = vmul.f32 %v1487_v42, %v1806_v11  ;;  %v1419_v18 = vpack.c.bf16 %v1485_v62, %v1487_v42 }
 0x3b8   :  { %v613_v21 = vadd.f32 %v612_v63, %v610_v0  ;;  %1420 = vmatprep.subr.bf16.mxu0 %v1419_v18 }
 0x3b9   :  { %1422 = vmatpush3.bf16.msra.mxu0 %v1419_v18 }
 0x3ba   :  { %v614_v3 = vadd.f32 %v613_v21, %v611_v1 }
 0x3bc   :  { %v615_v39 = vrot.slane %v614_v3, 4  ;;  %1336 = vmatmul.mubr.msk.f32.vlgmr.msra.gmra.mrb[8].mxu0 %vm127_vm0, %v1656_v12 }
 0x3bd   :  { %1338 = vmatprep.mubr.msk.f32.mxu0 %vm127_vm0, %v1664_v14 }
 0x3be   :  { %v616_v27 = vadd.f32 %v615_v39, %v614_v3 }
 0x3c0   :  { %v617_v55 = vrot.slane %v616_v27, 2  ;;  %1339 = vmatmul.mubr.msk.f32.gmra.mrb[10].mxu0 %vm127_vm0, %v1676_v16 }
 0x3c1   :  { %1363 = vmatprep.mubr.msk.f32.mxu0 %vm127_vm0, %v1635_v5 }
 0x3c2   :  { %v618_v53 = vadd.f32 %v617_v55, %v616_v27 }
 0x3c4   :  { %v619_v58 = vrot.slane %v618_v53, 1 }
 0x3c6   :  { %v620_v41 = vadd.f32 %v619_v58, %v618_v53 }
 0x3c8   :  { %v621_v4 = vadd.f32 %v620_v41, %v1823_v57 }
 0x3ca   :  { %623 = vst [vmem:[#allocation3 + $0x3] sm:$0x1] %v621_v4 }
 0x48f   :  { %v1337_v17 = vpop.f32.mrb[8].mxu0 }
 0x490   :  { %v726_v54 = vadd.f32 %v1337_v17, %v1759_v2  ;;  %v706_v20 = vpop.f32.mrb[9].mxu0 }
 0x491   :  { %v725_v7 = vadd.f32 %v706_v20, %v1742_v44 }
 0x492   :  { %1488 = vtanh.f32 %v726_v54 }
 0x493   :  { %1490 = vtanh.f32 %v725_v7  ;;  %v1340_v8 = vpop.f32.mrb[10].mxu0 }
 0x494   :  { %v728_v40 = vadd.f32 %v1340_v8, %v1777_v22  ;;  %v716_v9 = vpop.f32.mrb[11].mxu0 }
 0x495   :  { %v727_v15 = vadd.f32 %v716_v9, %v1779_v23 }
 0x496   :  { %1492 = vtanh.f32 %v728_v40 }
 0x497   :  { %1494 = vtanh.f32 %v727_v15 }
 0x49c   :  { %v1489_v13 = vpop.eup %1488 }
 0x49d   :  { %v1491_v19 = vpop.eup %1490  ;;  %v734_v28 = vmul.f32 %v1489_v13, %v1802_v43 }
 0x49e   :  { %v733_v34 = vmul.f32 %v1491_v19, %v1800_v31  ;;  %v1423_v2 = vpack.c.bf16 %v1489_v13, %v1491_v19 }
 0x4a0   :  { %v1493_v38 = vpop.eup %1492  ;;  %v737_v48 = vadd.f32 %v734_v28, %v733_v34  ;;  %1424 = vmatprep.subr.bf16.mxu1 %v1423_v2 }
 0x4a1   :  { %v1495_v44 = vpop.eup %1494  ;;  %1426 = vmatpush3.bf16.msra.mxu1 %v1423_v2  ;;  %v736_v50 = vmul.f32 %v1493_v38, %v1809_v33 }
 0x4a2   :  { %v735_v49 = vmul.f32 %v1495_v44, %v1806_v11  ;;  %v1427_v22 = vpack.c.bf16 %v1493_v38, %v1495_v44 }
 0x4a4   :  { %v738_v23 = vadd.f32 %v737_v48, %v735_v49  ;;  %1428 = vmatprep.subr.bf16.mxu1 %v1427_v22 }
 0x4a5   :  { %1430 = vmatpush3.bf16.msra.mxu1 %v1427_v22 }
 0x4a6   :  { %v739_v51 = vadd.f32 %v738_v23, %v736_v50 }
 0x4a8   :  { %v740_v29 = vrot.slane %v739_v51, 4  ;;  %1350 = vmatmul.mubr.msk.f32.vlgmr.msra.gmra.mrb[8].mxu1 %vm127_vm0, %v1656_v12 }
 0x4a9   :  { %1352 = vmatprep.mubr.msk.f32.mxu1 %vm127_vm0, %v1664_v14 }
 0x4aa   :  { %v741_v52 = vadd.f32 %v740_v29, %v739_v51 }
 0x4ac   :  { %v742_v30 = vrot.slane %v741_v52, 2  ;;  %1353 = vmatmul.mubr.msk.f32.gmra.mrb[10].mxu1 %vm127_vm0, %v1676_v16 }
 0x4ad   :  { %1377 = vmatprep.mubr.msk.f32.mxu1 %vm127_vm0, %v1635_v5 }
 0x4ae   :  { %v743_v59 = vadd.f32 %v742_v30, %v741_v52 }
 0x4b0   :  { %v744_v60 = vrot.slane %v743_v59, 1 }
 0x4b2   :  { %v745_v61 = vadd.f32 %v744_v60, %v743_v59 }
 0x4b4   :  { %v746_v56 = vadd.f32 %v745_v61, %v1823_v57 }
 0x4b6   :  { %748 = vst [vmem:[#allocation3 + $0x4] sm:$0x1] %v746_v56 }
 0x57b   :  { %v1351_v62 = vpop.f32.mrb[8].mxu1 }
 0x57c   :  { %v851_v63 = vadd.f32 %v1351_v62, %v1761_v6  ;;  %v831_v42 = vpop.f32.mrb[9].mxu1 }
 0x57d   :  { %v850_v0 = vadd.f32 %v831_v42, %v1745_v45 }
 0x57e   :  { %1496 = vtanh.f32 %v851_v63 }
 0x57f   :  { %1498 = vtanh.f32 %v850_v0  ;;  %v1354_v18 = vpop.f32.mrb[10].mxu1 }
 0x580   :  { %v853_v1 = vadd.f32 %v1354_v18, %v1781_v24  ;;  %v841_v21 = vpop.f32.mrb[11].mxu1 }
 0x581   :  { %v852_v5 = vadd.f32 %v841_v21, %v1783_v25 }
 0x582   :  { %1500 = vtanh.f32 %v853_v1 }
 0x583   :  { %1502 = vtanh.f32 %v852_v5 }
 0x588   :  { %v1497_v3 = vpop.eup %1496 }
 0x589   :  { %v1499_v39 = vpop.eup %1498  ;;  %v859_v27 = vmul.f32 %v1497_v3, %v1802_v43 }
 0x58a   :  { %v858_v55 = vmul.f32 %v1499_v39, %v1800_v31  ;;  %v1431_v6 = vpack.c.bf16 %v1497_v3, %v1499_v39 }
 0x58c   :  { %v1501_v53 = vpop.eup %1500  ;;  %v862_v58 = vadd.f32 %v859_v27, %v858_v55  ;;  %1432 = vmatprep.subr.bf16.mxu0 %v1431_v6 }
 0x58d   :  { %v1503_v45 = vpop.eup %1502  ;;  %1434 = vmatpush3.bf16.msra.mxu0 %v1431_v6  ;;  %v861_v4 = vmul.f32 %v1501_v53, %v1809_v33 }
 0x58e   :  { %v860_v41 = vmul.f32 %v1503_v45, %v1806_v11  ;;  %v1435_v24 = vpack.c.bf16 %v1501_v53, %v1503_v45 }
 0x590   :  { %v863_v25 = vadd.f32 %v862_v58, %v860_v41  ;;  %1436 = vmatprep.subr.bf16.mxu0 %v1435_v24 }
 0x591   :  { %1438 = vmatpush3.bf16.msra.mxu0 %v1435_v24 }
 0x592   :  { %v864_v17 = vadd.f32 %v863_v25, %v861_v4 }
 0x594   :  { %v865_v54 = vrot.slane %v864_v17, 4  ;;  %1364 = vmatmul.mubr.msk.f32.vlgmr.msra.gmra.mrb[12].mxu0 %vm127_vm0, %v1656_v12 }
 0x595   :  { %1366 = vmatprep.mubr.msk.f32.mxu0 %vm127_vm0, %v1664_v14 }
 0x596   :  { %v866_v20 = vadd.f32 %v865_v54, %v864_v17 }
 0x598   :  { %v867_v7 = vrot.slane %v866_v20, 2  ;;  %1367 = vmatmul.mubr.msk.f32.gmra.mrb[14].mxu0 %vm127_vm0, %v1676_v16 }
 0x59a   :  { %v868_v8 = vadd.f32 %v867_v7, %v866_v20 }
 0x59c   :  { %v869_v40 = vrot.slane %v868_v8, 1 }
 0x59e   :  { %v870_v9 = vadd.f32 %v869_v40, %v868_v8 }
 0x5a0   :  { %v871_v15 = vadd.f32 %v870_v9, %v1823_v57 }
 0x5a2   :  { %873 = vst [vmem:[#allocation3 + $0x5] sm:$0x1] %v871_v15 }
 0x667   :  { %v1365_v13 = vpop.f32.mrb[12].mxu0 }
 0x668   :  { %v976_v19 = vadd.f32 %v1365_v13, %v1763_v10  ;;  %v956_v28 = vpop.f32.mrb[13].mxu0 }
 0x669   :  { %v975_v34 = vadd.f32 %v956_v28, %v1748_v46 }
 0x66a   :  { %1504 = vtanh.f32 %v976_v19 }
 0x66b   :  { %1506 = vtanh.f32 %v975_v34  ;;  %v1368_v2 = vpop.f32.mrb[14].mxu0 }
 0x66c   :  { %v978_v38 = vadd.f32 %v1368_v2, %v1785_v26  ;;  %v966_v48 = vpop.f32.mrb[15].mxu0 }
 0x66d   :  { %v977_v44 = vadd.f32 %v966_v48, %v1789_v35 }
 0x66e   :  { %1508 = vtanh.f32 %v978_v38 }
 0x66f   :  { %1510 = vtanh.f32 %v977_v44 }
 0x674   :  { %v1505_v49 = vpop.eup %1504 }
 0x675   :  { %v1507_v22 = vpop.eup %1506  ;;  %v984_v50 = vmul.f32 %v1505_v49, %v1802_v43 }
 0x676   :  { %v983_v23 = vmul.f32 %v1507_v22, %v1800_v31  ;;  %v1439_v10 = vpack.c.bf16 %v1505_v49, %v1507_v22 }
 0x678   :  { %v1509_v51 = vpop.eup %1508  ;;  %v987_v29 = vadd.f32 %v984_v50, %v983_v23  ;;  %1440 = vmatprep.subr.bf16.mxu1 %v1439_v10 }
 0x679   :  { %v1511_v46 = vpop.eup %1510  ;;  %1442 = vmatpush3.bf16.msra.mxu1 %v1439_v10  ;;  %v986_v30 = vmul.f32 %v1509_v51, %v1809_v33 }
 0x67a   :  { %v985_v52 = vmul.f32 %v1511_v46, %v1806_v11  ;;  %v1443_v26 = vpack.c.bf16 %v1509_v51, %v1511_v46 }
 0x67c   :  { %v988_v35 = vadd.f32 %v987_v29, %v985_v52  ;;  %1444 = vmatprep.subr.bf16.mxu1 %v1443_v26 }
 0x67d   :  { %1446 = vmatpush3.bf16.msra.mxu1 %v1443_v26 }
 0x67e   :  { %v989_v59 = vadd.f32 %v988_v35, %v986_v30 }
 0x680   :  { %v990_v60 = vrot.slane %v989_v59, 4  ;;  %1378 = vmatmul.mubr.msk.f32.vlgmr.msra.gmra.mrb[12].mxu1 %vm127_vm0, %v1656_v12 }
 0x681   :  { %1380 = vmatprep.mubr.msk.f32.mxu1 %vm127_vm0, %v1664_v14 }
 0x682   :  { %v991_v61 = vadd.f32 %v990_v60, %v989_v59 }
 0x684   :  { %v992_v56 = vrot.slane %v991_v61, 2  ;;  %1381 = vmatmul.mubr.msk.f32.gmra.mrb[14].mxu1 %vm127_vm0, %v1676_v16 }
 0x686   :  { %v993_v62 = vadd.f32 %v992_v56, %v991_v61 }
 0x688   :  { %v994_v63 = vrot.slane %v993_v62, 1 }
 0x68a   :  { %v995_v42 = vadd.f32 %v994_v63, %v993_v62 }
 0x68c   :  { %v996_v0 = vadd.f32 %v995_v42, %v1823_v57 }
 0x68e   :  { %998 = vst [vmem:[#allocation3 + $0x6] sm:$0x1] %v996_v0 }
 0x753   :  { %v1379_v18 = vpop.f32.mrb[12].mxu1 }
 0x754   :  { %v1101_v1 = vadd.f32 %v1379_v18, %v1787_v32  ;;  %v1081_v21 = vpop.f32.mrb[13].mxu1 }
 0x755   :  { %v1100_v12 = vadd.f32 %v1081_v21, %v1751_v47 }
 0x756   :  { %1512 = vtanh.f32 %v1101_v1 }
 0x757   :  { %1514 = vtanh.f32 %v1100_v12  ;;  %v1382_v14 = vpop.f32.mrb[14].mxu1 }
 0x758   :  { %v1103_v5 = vadd.f32 %v1382_v14, %v1791_v36  ;;  %v1091_v3 = vpop.f32.mrb[15].mxu1 }
 0x759   :  { %v1102_v16 = vadd.f32 %v1091_v3, %v1793_v37 }
 0x75a   :  { %1516 = vtanh.f32 %v1103_v5 }
 0x75b   :  { %1518 = vtanh.f32 %v1102_v16 }
 0x760   :  { %v1513_v39 = vpop.eup %1512 }
 0x761   :  { %v1515_v27 = vpop.eup %1514  ;;  %v1109_v55 = vmul.f32 %v1513_v39, %v1802_v43  ;;  %1125 = vst [vmem:[#allocation5 + $0x8] sm:$0xff] %v1513_v39 }
 0x762   :  { %v1108_v32 = vmul.f32 %v1515_v27, %v1800_v31  ;;  %1124 = vst [vmem:[#allocation5] sm:$0xff] %v1515_v27 }
 0x764   :  { %v1517_v47 = vpop.eup %1516  ;;  %v1112_v6 = vadd.f32 %v1109_v55, %v1108_v32 }
 0x765   :  { %v1519_v53 = vpop.eup %1518  ;;  %1127 = vst [vmem:[#allocation5 + $0x18] sm:$0xff] %v1517_v47 }
 0x766   :  { %v1110_v36 = vmul.f32 %v1519_v53, %v1806_v11  ;;  %1126 = vst [vmem:[#allocation5 + $0x10] sm:$0xff] %v1519_v53 }
 0x767   :  { %1531 = shalt.err (!%p1528_p4)
}
 0x768   :  { %s1532_s3 = scalar_lea.hbm %s1965_s8, 512 }
 0x769   :  { %p1533_p5 = scmp.ne.s32.totalorder %s1965_s8, %s1532_s3  ;;  %p1536_p6 = scmp.lt.u32.totalorder %s1532_s3, %s1965_s8 }
 0x76b   :  { %p1538_p7 = pnand %p1536_p6, %p1533_p5 }
 0x76d   :  { %1541 = shalt.err (!%p1538_p7)
}
 0x76e   :  { %s1570_s17 = smov 128   ;;  %s1571_s18 = smov 8   ;;  %v1111_v37 = vmul.f32 %v1517_v47, %v1809_v33  ;;  %v1113_v31 = vadd.f32 %v1112_v6, %v1110_v36 }
 0x76f   :  { %1151 = dma.vmem_to_hbm [thread:$0]  %s1146_s12, 512, %s1965_s8, [#allocation6], %s1570_s17, %s1570_s17, %s1571_s18  }
 0x770   :  { %v1114_v43 = vadd.f32 %v1113_v31, %v1111_v37  ;;  %s1572_s21 = smov [#allocation3]  }
 0x771   :  { %s1133_s22 = sshll.u32 %s1572_s21, 4  ;;  %s1134_s22 = int_to_ptr.vmem [resolvable:$true] %s1133_s22 }
 0x772   :  { %v1115_v11 = vrot.slane %v1114_v43, 4  ;;  %s1542_s23 = scalar_lea.vmem %s1134_s22, 128  ;;  %p1547_p9 = scmp.lt.s32.totalorder %s1134_s22, %s1134_s22 }
 0x773   :  { %p1543_p8 = scmp.ne.s32.totalorder %s1134_s22, %s1542_s23  ;;  %p1548_p10 = scmp.lt.s32.totalorder %s1542_s23, %s1542_s23 }
 0x774   :  { %v1116_v58 = vadd.f32 %v1115_v11, %v1114_v43 }
 0x775   :  { %p1549_p11 = por %p1548_p10, %p1547_p9 }
 0x776   :  { %v1117_v45 = vrot.slane %v1116_v58, 2 }
 0x777   :  { %p1550_p12 = pnand %p1549_p11, %p1543_p8 }
 0x778   :  { %v1118_v41 = vadd.f32 %v1117_v45, %v1116_v58 }
 0x77a   :  { %v1119_v24 = vrot.slane %v1118_v41, 1 }
 0x77c   :  { %v1120_v4 = vadd.f32 %v1119_v24, %v1118_v41 }
 0x77e   :  { %v1121_v25 = vadd.f32 %v1120_v4, %v1823_v57 }
 0x780   :  { %1123 = vst [vmem:[#allocation3 + $0x7] sm:$0x1] %v1121_v25 }
 0x781   :  { %1553 = shalt.err (!%p1550_p12)
}
 0x782   :  { %s1554_s25 = scalar_lea.hbm %s1964_s7, 128 }
 0x783   :  { %p1555_p13 = scmp.ne.s32.totalorder %s1964_s7, %s1554_s25  ;;  %p1558_p0 = scmp.lt.u32.totalorder %s1554_s25, %s1964_s7 }
 0x785   :  { %p1560_p1 = pnand %p1558_p0, %p1555_p13 }
 0x787   :  { %1563 = shalt.err (!%p1560_p1)
}
 0x788   :  { %s1573_s29 = smov 16   ;;  %s1574_s30 = smov 1  }
 0x789   :  { %1139 = dma.vmem_to_hbm [thread:$0]  %s1134_s22, 128, %s1964_s7, [#allocation4], %s1573_s29, %s1573_s29, %s1574_s30  }
 0x78a   :  { %1564 = dma.done.wait [#allocation4], 128  }
 0x78b   :  { %1565 = vsyncadd [#allocation4], 4294967168 }
 0x78c   :  { %1566 = dma.done.wait [#allocation6], 512  }
 0x78d   :  { %1567 = vsyncadd [#allocation6], 4294966784 }
 0x78e   :  { %1158 = vsyncpa [#allocation4], 1 }
 0x78f   :  { %1159 = vsyncpa [#allocation6], 1 }

</bundles_post_ra>
